<compile_context>
chip_gen: v7x
topology: tpu7x:2x2x1
jax: 0.10.0
libtpu: 0.0.40
codegen_flags: <defaults>
</compile_context>

<pallas_src>
import numpy as np
import jax
import jax.numpy as jnp
from jax import lax
from jax.experimental import pallas as pl
from jax.experimental.pallas import tpu as pltpu


# ---------------------------------------------------------------------------
# pure-JAX sinusoidal embedding (matches the PyTorch helper; used by the ref)
# ---------------------------------------------------------------------------
def sinusoidal_embedding(t, dim):
    half_dim = dim // 2
    emb = jnp.log(jnp.float32(10000.0)) / (half_dim - 1)
    emb = jnp.exp(jnp.arange(half_dim, dtype=jnp.float32) * -emb)
    emb = t.astype(jnp.float32)[:, None] * emb[None, :]
    emb = jnp.concatenate([jnp.sin(emb), jnp.cos(emb)], axis=1)
    if dim % 2 == 1:
        emb = jnp.concatenate([emb, jnp.zeros((emb.shape[0], 1), jnp.float32)], axis=1)
    return emb


# ---------------------------------------------------------------------------
# Fused kernel: sinusoid -> (folded) time/fusion MLP -> one-hot label term
#   t_ref : [TB, 1] f32 (raw timestep column),  y_ref : [TB, 1] i32 (class id)
#   t_emb = sin(t * inv_freq + offset)                 # [TB, D]  (cos folded in)
#   h1    = SiLU(t_emb @ W1 + b1)                      # [TB, 4D]
#   g     = SiLU(h1 @ W2f + onehot(y) @ Ltab + bf1')   # [TB, 2D]
#   out   = g @ Wf2p + bf2p                            # [TB, Dp] (lane-dense)
# ---------------------------------------------------------------------------
def cond_embed_kernel(t_ref, y_ref, freqoff_ref,
                      w1_ref, b1_ref,
                      w2f_ref, ltab_ref, bf1_ref,
                      wf2_ref, bf2_ref,
                      o_ref):
    f32 = jnp.float32
    bf16 = jnp.bfloat16
    tb = t_ref.shape[0]

    # --- sinusoidal embedding with a single sin() pass (cos lanes carry a
    #     +pi/2 phase offset baked into freqoff_ref row 1).
    fo = freqoff_ref[...]                                     # [2, D] f32
    phase = t_ref[...] * fo[0:1, :] + fo[1:2, :]              # [TB, D]
    t_emb = jnp.sin(phase)                                    # EUP, f32

    # --- label contribution: one-hot @ (label_table @ Wf1b)  (tiny MXU op)
    ncp = ltab_ref.shape[0]
    cls = lax.broadcasted_iota(jnp.int32, (tb, ncp), 1)
    onehot = (cls == y_ref[...]).astype(bf16)
    label_term = jnp.dot(onehot, ltab_ref[...], preferred_element_type=f32)

    # --- time_embed[0] + SiLU  (bf16 MXU operands, f32 accumulate/elementwise)
    h1 = jnp.dot(t_emb.astype(bf16), w1_ref[...],
                 preferred_element_type=f32) + b1_ref[...]
    h1 = h1 * jax.nn.sigmoid(h1)

    # --- folded (time_embed[2] + fusion[0]) + label term + SiLU
    g = (jnp.dot(h1.astype(bf16), w2f_ref[...], preferred_element_type=f32)
         + label_term + bf1_ref[...])
    g = g * jax.nn.sigmoid(g)

    # --- fusion[2]  (output columns padded to Dp -> unmasked lane-dense store)
    o_ref[...] = (jnp.dot(g.astype(bf16), wf2_ref[...],
                          preferred_element_type=f32)
                  + bf2_ref[...]).astype(o_ref.dtype)


# ---------------------------------------------------------------------------
# One-time parameter folding (done at init, in f32 'highest' precision)
# ---------------------------------------------------------------------------
def fold_params(raw):
    hp = jax.lax.Precision.HIGHEST
    D = raw["w1"].shape[0]
    assert D % 2 == 0 and D >= 4, "kernel handles even time_dim >= 4"
    Dp = max(128, ((D + 127) // 128) * 128)          # lane-dense output width

    w2f = jnp.dot(raw["w2"], raw["wf1a"], precision=hp)                 # [4D, 2D]
    bf1p = raw["bf1"] + jnp.dot(raw["b2"], raw["wf1a"], precision=hp)   # [1, 2D]
    ltab = jnp.dot(raw["label_table"], raw["wf1b"], precision=hp)       # [NC, 2D]
    nc = ltab.shape[0]
    ncp = ((nc + 15) // 16) * 16                     # bf16 sublane packing (16)
    ltab = jnp.pad(ltab, ((0, ncp - nc), (0, 0)))

    wf2 = jnp.pad(raw["wf2"], ((0, 0), (0, Dp - D)))                    # [2D, Dp]
    bf2 = jnp.pad(raw["bf2"], ((0, 0), (0, Dp - D)))                    # [1, Dp]

    # [2, D] constant: row 0 = inv_freq per lane, row 1 = phase offset per lane
    half = D // 2
    k = np.arange(D, dtype=np.float32)
    kmod = np.where(k >= half, k - half, k)
    inv_freq = np.exp(kmod * (-np.log(10000.0) / (half - 1)))
    offset = np.where(k >= half, np.float32(np.pi / 2.0), np.float32(0.0))
    freq_off = jnp.asarray(np.stack([inv_freq, offset]).astype(np.float32))

    bf16 = jnp.bfloat16
    return {
        "freq_off": freq_off,
        "w1": raw["w1"].astype(bf16),
        "b1": raw["b1"].astype(jnp.float32),
        "w2f": w2f.astype(bf16),
        "ltab": ltab.astype(bf16),
        "bf1p": bf1p.astype(jnp.float32),
        "wf2": wf2.astype(bf16),
        "bf2": bf2.astype(jnp.float32),
    }


# ---------------------------------------------------------------------------
# Wrapper reproducing ConditionalEmbedding.forward(t, y)
# ---------------------------------------------------------------------------
def conditional_embedding(t, y, fp, *, time_dim):
    assert time_dim % 2 == 0 and time_dim >= 4, "kernel handles even time_dim >= 4"
    # TODO(synk): odd time_dim zero-pad branch of sinusoidal_embedding not fused.
    B = t.shape[0]
    D = time_dim
    Dp = fp["wf2"].shape[1]                     # lane-padded output width

    # Batch tile: multiple of 256 for big batches, capped at 512 (v5e-safe),
    # and >= 2 grid steps whenever B >= 512 (v7x dual-TC sharding).
    if B >= 512:
        TB = max(256, min(512, ((B // 2) // 256) * 256))
    elif B >= 256:
        TB = 256
    else:
        TB = max(8, ((B + 7) // 8) * 8)
    Bp = pl.cdiv(B, TB) * TB

    t_col = jnp.pad(t.astype(jnp.float32)[:, None], ((0, Bp - B), (0, 0)))
    y_col = jnp.pad(y.astype(jnp.int32)[:, None], ((0, Bp - B), (0, 0)))

    ncp = fp["ltab"].shape[0]
    act_spec = lambda shape: pl.BlockSpec(shape, lambda i: (i, 0))
    wgt_spec = lambda shape: pl.BlockSpec(shape, lambda i: (0, 0))  # VMEM-resident

    out = pl.pallas_call(
        cond_embed_kernel,
        out_shape=jax.ShapeDtypeStruct((Bp, Dp), jnp.float32),
        grid=(Bp // TB,),
        in_specs=[
            act_spec((TB, 1)),                # t column (f32)
            act_spec((TB, 1)),                # y column (i32)
            wgt_spec((2, D)),                 # [inv_freq; phase offset]
            wgt_spec((D, 4 * D)),             # w1 (bf16)
            wgt_spec((1, 4 * D)),             # b1
            wgt_spec((4 * D, 2 * D)),         # w2f = w2 @ wf1a (bf16)
            wgt_spec((ncp, 2 * D)),           # folded label table (bf16)
            wgt_spec((1, 2 * D)),             # bf1' = bf1 + b2 @ wf1a
            wgt_spec((2 * D, Dp)),            # wf2 (bf16, lane-padded)
            wgt_spec((1, Dp)),                # bf2 (lane-padded)
        ],
        out_specs=act_spec((TB, Dp)),
        compiler_params=pltpu.CompilerParams(
            dimension_semantics=("parallel",),
            vmem_limit_bytes=32 * 1024 * 1024),
    )(t_col, y_col, fp["freq_off"], fp["w1"], fp["b1"], fp["w2f"], fp["ltab"],
      fp["bf1p"], fp["wf2"], fp["bf2"])
    return out[:B, :D]


# ---------------------------------------------------------------------------
# References
# ---------------------------------------------------------------------------
def reference_f32(t, y, raw, *, time_dim):
    """Full-precision, un-folded semantics of the PyTorch module."""
    hp = jax.lax.Precision.HIGHEST
    t_emb = sinusoidal_embedding(t, time_dim)
    h1 = jnp.dot(t_emb, raw["w1"], precision=hp) + raw["b1"]
    h1 = h1 * jax.nn.sigmoid(h1)
    h2 = jnp.dot(h1, raw["w2"], precision=hp) + raw["b2"]
    l_emb = jnp.take(raw["label_table"], y, axis=0)
    combined = jnp.concatenate([h2, l_emb], axis=1)
    wf1 = jnp.concatenate([raw["wf1a"], raw["wf1b"]], axis=0)
    g = jnp.dot(combined, wf1, precision=hp) + raw["bf1"]
    g = g * jax.nn.sigmoid(g)
    return jnp.dot(g, raw["wf2"], precision=hp) + raw["bf2"]


def reference_folded_bf16(t, y, fp, *, time_dim):
    """Same folded weights / sin-offset trick / bf16 MXU math as the kernel."""
    f32, bf16 = jnp.float32, jnp.bfloat16
    fo = fp["freq_off"]
    phase = t.astype(f32)[:, None] * fo[0:1, :] + fo[1:2, :]
    t_emb = jnp.sin(phase).astype(bf16)
    h1 = jnp.dot(t_emb, fp["w1"], preferred_element_type=f32) + fp["b1"]
    h1 = h1 * jax.nn.sigmoid(h1)
    onehot = jax.nn.one_hot(y, fp["ltab"].shape[0], dtype=bf16)
    lterm = jnp.dot(onehot, fp["ltab"], preferred_element_type=f32)
    g = (jnp.dot(h1.astype(bf16), fp["w2f"], preferred_element_type=f32)
         + lterm + fp["bf1p"])
    g = g * jax.nn.sigmoid(g)
    out = (jnp.dot(g.astype(bf16), fp["wf2"], preferred_element_type=f32)
           + fp["bf2"])
    return out[:, :time_dim]


if __name__ == "__main__":
    B = 8
    NUM_CLASSES = 10
    TIME_DIM = 64
    LABEL_DIM = 32

    key = jax.random.PRNGKey(0)
    keys = jax.random.split(key, 12)
    D, L = TIME_DIM, LABEL_DIM

    # Weights stored as [in, out]; y = x @ W + b (== PyTorch x @ W.T + b).
    raw = {
        "w1":   jax.random.normal(keys[0], (D, 4 * D), jnp.float32) * 0.05,
        "b1":   jax.random.normal(keys[1], (1, 4 * D), jnp.float32) * 0.05,
        "w2":   jax.random.normal(keys[2], (4 * D, 4 * D), jnp.float32) * 0.05,
        "b2":   jax.random.normal(keys[3], (1, 4 * D), jnp.float32) * 0.05,
        # fusion Linear(4D + L, 2D) split into the time part and the label part
        "wf1a": jax.random.normal(keys[4], (4 * D, 2 * D), jnp.float32) * 0.05,
        "wf1b": jax.random.normal(keys[5], (L, 2 * D), jnp.float32) * 0.05,
        "bf1":  jax.random.normal(keys[6], (1, 2 * D), jnp.float32) * 0.05,
        "wf2":  jax.random.normal(keys[7], (2 * D, D), jnp.float32) * 0.05,
        "bf2":  jax.random.normal(keys[8], (1, D), jnp.float32) * 0.05,
        "label_table": jax.random.normal(keys[9], (NUM_CLASSES, L), jnp.float32),
    }
    fp = fold_params(raw)

    t = jax.random.randint(keys[10], (B,), 0, 1000, dtype=jnp.int32)
    y = jax.random.randint(keys[11], (B,), 0, NUM_CLASSES, dtype=jnp.int32)

    out = conditional_embedding(t, y, fp, time_dim=TIME_DIM)
    out = jax.block_until_ready(out)
    assert out.shape == (B, TIME_DIM)

    # 1) tight check vs. an exact emulation of the kernel's (folded, bf16) math
    ref_bf16 = reference_folded_bf16(t, y, fp, time_dim=TIME_DIM)
    np.testing.assert_allclose(np.asarray(out), np.asarray(ref_bf16),
                               rtol=1e-3, atol=1e-3)

    # 2) loose check vs. the full-precision module semantics (bf16 MXU operands
    #    + folded weights introduce ~0.2-1% relative error; f32 accumulation
    #    keeps it bounded)
    ref_f32 = reference_f32(t, y, raw, time_dim=TIME_DIM)
    np.testing.assert_allclose(np.asarray(out), np.asarray(ref_f32),
                               rtol=5e-2, atol=2e-2)

    print("KERNEL_OK")
</pallas_src>

<mosaic_0001>
module attributes {stable_mosaic.version = 11 : i64} {
  func.func @cond_embed_kernel(%arg0: i32, %arg1: memref<8x1xf32, #tpu.memory_space<vmem>>, %arg2: memref<8x1xi32, #tpu.memory_space<vmem>>, %arg3: memref<2x64xf32, #tpu.memory_space<vmem>>, %arg4: memref<64x256xbf16, #tpu.memory_space<vmem>>, %arg5: memref<1x256xf32, #tpu.memory_space<vmem>>, %arg6: memref<256x128xbf16, #tpu.memory_space<vmem>>, %arg7: memref<16x128xbf16, #tpu.memory_space<vmem>>, %arg8: memref<1x128xf32, #tpu.memory_space<vmem>>, %arg9: memref<128x128xbf16, #tpu.memory_space<vmem>>, %arg10: memref<1x128xf32, #tpu.memory_space<vmem>>, %arg11: memref<8x128xf32, #tpu.memory_space<vmem>>) attributes {dimension_semantics = [#tpu.dimension_semantics<parallel>], iteration_bounds = array<i64: 1>, scalar_prefetch = 0 : i64, scratch_operands = 0 : i64, tpu.core_type = #tpu.core_type<tc>, window_params = [{transform_indices = @transform_0, window_bounds = array<i64: 8, 1>}, {transform_indices = @transform_1, window_bounds = array<i64: 8, 1>}, {pipeline_mode = #tpu.pipeline_mode<synchronous>, transform_indices = @transform_2, window_bounds = array<i64: 2, 64>}, {pipeline_mode = #tpu.pipeline_mode<synchronous>, transform_indices = @transform_3, window_bounds = array<i64: 64, 256>}, {pipeline_mode = #tpu.pipeline_mode<synchronous>, transform_indices = @transform_4, window_bounds = array<i64: 1, 256>}, {pipeline_mode = #tpu.pipeline_mode<synchronous>, transform_indices = @transform_5, window_bounds = array<i64: 256, 128>}, {pipeline_mode = #tpu.pipeline_mode<synchronous>, transform_indices = @transform_6, window_bounds = array<i64: 16, 128>}, {pipeline_mode = #tpu.pipeline_mode<synchronous>, transform_indices = @transform_7, window_bounds = array<i64: 1, 128>}, {pipeline_mode = #tpu.pipeline_mode<synchronous>, transform_indices = @transform_8, window_bounds = array<i64: 128, 128>}, {pipeline_mode = #tpu.pipeline_mode<synchronous>, transform_indices = @transform_9, window_bounds = array<i64: 1, 128>}, {transform_indices = @transform_10, window_bounds = array<i64: 8, 128>}]} {
    %c0 = arith.constant 0 : index
    %c0_0 = arith.constant 0 : index
    %0 = vector.load %arg3[%c0, %c0_0] : memref<2x64xf32, #tpu.memory_space<vmem>>, vector<2x64xf32>
    %c0_1 = arith.constant 0 : index
    %c0_2 = arith.constant 0 : index
    %1 = vector.load %arg1[%c0_1, %c0_2] : memref<8x1xf32, #tpu.memory_space<vmem>>, vector<8x1xf32>
    %2 = vector.extract_strided_slice %0 {offsets = [0, 0], sizes = [1, 64], strides = [1, 1]} : vector<2x64xf32> to vector<1x64xf32>
    %3 = vector.broadcast %1 : vector<8x1xf32> to vector<8x64xf32>
    %4 = vector.broadcast %2 : vector<1x64xf32> to vector<8x64xf32>
    %5 = arith.mulf %3, %4 : vector<8x64xf32>
    %6 = vector.extract_strided_slice %0 {offsets = [1, 0], sizes = [1, 64], strides = [1, 1]} : vector<2x64xf32> to vector<1x64xf32>
    %7 = vector.broadcast %6 : vector<1x64xf32> to vector<8x64xf32>
    %8 = arith.addf %5, %7 : vector<8x64xf32>
    %9 = math.sin %8 : vector<8x64xf32>
    %10 = tpu.iota {dimensions = array<i32: 1>} : vector<8x16xi32>
    %c0_3 = arith.constant 0 : index
    %c0_4 = arith.constant 0 : index
    %11 = vector.load %arg2[%c0_3, %c0_4] : memref<8x1xi32, #tpu.memory_space<vmem>>, vector<8x1xi32>
    %12 = vector.broadcast %11 : vector<8x1xi32> to vector<8x16xi32>
    %13 = arith.cmpi eq, %10, %12 : vector<8x16xi32>
    %14 = arith.extui %13 : vector<8x16xi1> to vector<8x16xi32>
    %15 = arith.sitofp %14 : vector<8x16xi32> to vector<8x16xf32>
    %16 = arith.truncf %15 : vector<8x16xf32> to vector<8x16xbf16>
    %c0_5 = arith.constant 0 : index
    %c0_6 = arith.constant 0 : index
    %17 = vector.load %arg7[%c0_5, %c0_6] : memref<16x128xbf16, #tpu.memory_space<vmem>>, vector<16x128xbf16>
    %cst = arith.constant dense<0.000000e+00> : vector<8x128xf32>
    %18 = tpu.matmul %16, %17, %cst {dimension_numbers = #tpu.dot_dimension_numbers<[1], [0], [0], [1], [0, 0, 1, 1], [], []>} : vector<8x16xbf16>, vector<16x128xbf16>, vector<8x128xf32> -> vector<8x128xf32>
    %19 = arith.truncf %9 : vector<8x64xf32> to vector<8x64xbf16>
    %c0_7 = arith.constant 0 : index
    %c0_8 = arith.constant 0 : index
    %20 = vector.load %arg4[%c0_7, %c0_8] : memref<64x256xbf16, #tpu.memory_space<vmem>>, vector<64x256xbf16>
    %cst_9 = arith.constant dense<0.000000e+00> : vector<8x256xf32>
    %21 = tpu.matmul %19, %20, %cst_9 {dimension_numbers = #tpu.dot_dimension_numbers<[1], [0], [0], [1], [0, 0, 1, 1], [], []>} : vector<8x64xbf16>, vector<64x256xbf16>, vector<8x256xf32> -> vector<8x256xf32>
    %c0_10 = arith.constant 0 : index
    %c0_11 = arith.constant 0 : index
    %22 = vector.load %arg5[%c0_10, %c0_11] : memref<1x256xf32, #tpu.memory_space<vmem>>, vector<1x256xf32>
    %23 = vector.broadcast %22 : vector<1x256xf32> to vector<8x256xf32>
    %24 = arith.addf %21, %23 : vector<8x256xf32>
    %25 = arith.negf %24 : vector<8x256xf32>
    %26 = math.exp %25 : vector<8x256xf32>
    %cst_12 = arith.constant 1.000000e+00 : f32
    %27 = vector.broadcast %cst_12 : f32 to vector<8x256xf32>
    %28 = arith.addf %27, %26 : vector<8x256xf32>
    %29 = arith.divf %27, %28 : vector<8x256xf32>
    %30 = arith.mulf %24, %29 : vector<8x256xf32>
    %31 = arith.truncf %30 : vector<8x256xf32> to vector<8x256xbf16>
    %c0_13 = arith.constant 0 : index
    %c0_14 = arith.constant 0 : index
    %32 = vector.load %arg6[%c0_13, %c0_14] : memref<256x128xbf16, #tpu.memory_space<vmem>>, vector<256x128xbf16>
    %cst_15 = arith.constant dense<0.000000e+00> : vector<8x128xf32>
    %33 = tpu.matmul %31, %32, %cst_15 {dimension_numbers = #tpu.dot_dimension_numbers<[1], [0], [0], [1], [0, 0, 1, 1], [], []>} : vector<8x256xbf16>, vector<256x128xbf16>, vector<8x128xf32> -> vector<8x128xf32>
    %34 = arith.addf %33, %18 : vector<8x128xf32>
    %c0_16 = arith.constant 0 : index
    %c0_17 = arith.constant 0 : index
    %35 = vector.load %arg8[%c0_16, %c0_17] : memref<1x128xf32, #tpu.memory_space<vmem>>, vector<1x128xf32>
    %36 = vector.broadcast %35 : vector<1x128xf32> to vector<8x128xf32>
    %37 = arith.addf %34, %36 : vector<8x128xf32>
    %38 = arith.negf %37 : vector<8x128xf32>
    %39 = math.exp %38 : vector<8x128xf32>
    %cst_18 = arith.constant 1.000000e+00 : f32
    %40 = vector.broadcast %cst_18 : f32 to vector<8x128xf32>
    %41 = arith.addf %40, %39 : vector<8x128xf32>
    %42 = arith.divf %40, %41 : vector<8x128xf32>
    %43 = arith.mulf %37, %42 : vector<8x128xf32>
    %44 = arith.truncf %43 : vector<8x128xf32> to vector<8x128xbf16>
    %c0_19 = arith.constant 0 : index
    %c0_20 = arith.constant 0 : index
    %45 = vector.load %arg9[%c0_19, %c0_20] : memref<128x128xbf16, #tpu.memory_space<vmem>>, vector<128x128xbf16>
    %cst_21 = arith.constant dense<0.000000e+00> : vector<8x128xf32>
    %46 = tpu.matmul %44, %45, %cst_21 {dimension_numbers = #tpu.dot_dimension_numbers<[1], [0], [0], [1], [0, 0, 1, 1], [], []>} : vector<8x128xbf16>, vector<128x128xbf16>, vector<8x128xf32> -> vector<8x128xf32>
    %c0_22 = arith.constant 0 : index
    %c0_23 = arith.constant 0 : index
    %47 = vector.load %arg10[%c0_22, %c0_23] : memref<1x128xf32, #tpu.memory_space<vmem>>, vector<1x128xf32>
    %48 = vector.broadcast %47 : vector<1x128xf32> to vector<8x128xf32>
    %49 = arith.addf %46, %48 : vector<8x128xf32>
    %c0_24 = arith.constant 0 : index
    %c0_25 = arith.constant 0 : index
    %50 = vector.load %arg11[%c0_24, %c0_25] : memref<8x128xf32, #tpu.memory_space<vmem>>, vector<8x128xf32>
    tpu.vector_store %arg11[%c0_24, %c0_25], %49 {strides = array<i32>} : memref<8x128xf32, #tpu.memory_space<vmem>>, vector<8x128xf32>,
    return
  }
  func.func @transform_0(%arg0: i32) -> (i32, i32) {
    %c0_i32 = arith.constant 0 : i32
    %c0_i32_0 = arith.constant 0 : i32
    return %arg0, %c0_i32 : i32, i32
  }
  func.func @transform_1(%arg0: i32) -> (i32, i32) {
    %c0_i32 = arith.constant 0 : i32
    %c0_i32_0 = arith.constant 0 : i32
    return %arg0, %c0_i32 : i32, i32
  }
  func.func @transform_2(%arg0: i32) -> (i32, i32) {
    %c0_i32 = arith.constant 0 : i32
    %c0_i32_0 = arith.constant 0 : i32
    %c0_i32_1 = arith.constant 0 : i32
    return %c0_i32, %c0_i32_0 : i32, i32
  }
  func.func @transform_3(%arg0: i32) -> (i32, i32) {
    %c0_i32 = arith.constant 0 : i32
    %c0_i32_0 = arith.constant 0 : i32
    %c0_i32_1 = arith.constant 0 : i32
    return %c0_i32, %c0_i32_0 : i32, i32
  }
  func.func @transform_4(%arg0: i32) -> (i32, i32) {
    %c0_i32 = arith.constant 0 : i32
    %c0_i32_0 = arith.constant 0 : i32
    %c0_i32_1 = arith.constant 0 : i32
    return %c0_i32, %c0_i32_0 : i32, i32
  }
  func.func @transform_5(%arg0: i32) -> (i32, i32) {
    %c0_i32 = arith.constant 0 : i32
    %c0_i32_0 = arith.constant 0 : i32
    %c0_i32_1 = arith.constant 0 : i32
    return %c0_i32, %c0_i32_0 : i32, i32
  }
  func.func @transform_6(%arg0: i32) -> (i32, i32) {
    %c0_i32 = arith.constant 0 : i32
    %c0_i32_0 = arith.constant 0 : i32
    %c0_i32_1 = arith.constant 0 : i32
    return %c0_i32, %c0_i32_0 : i32, i32
  }
  func.func @transform_7(%arg0: i32) -> (i32, i32) {
    %c0_i32 = arith.constant 0 : i32
    %c0_i32_0 = arith.constant 0 : i32
    %c0_i32_1 = arith.constant 0 : i32
    return %c0_i32, %c0_i32_0 : i32, i32
  }
  func.func @transform_8(%arg0: i32) -> (i32, i32) {
    %c0_i32 = arith.constant 0 : i32
    %c0_i32_0 = arith.constant 0 : i32
    %c0_i32_1 = arith.constant 0 : i32
    return %c0_i32, %c0_i32_0 : i32, i32
  }
  func.func @transform_9(%arg0: i32) -> (i32, i32) {
    %c0_i32 = arith.constant 0 : i32
    %c0_i32_0 = arith.constant 0 : i32
    %c0_i32_1 = arith.constant 0 : i32
    return %c0_i32, %c0_i32_0 : i32, i32
  }
  func.func @transform_10(%arg0: i32) -> (i32, i32) {
    %c0_i32 = arith.constant 0 : i32
    %c0_i32_0 = arith.constant 0 : i32
    return %arg0, %c0_i32 : i32, i32
  }
}

</mosaic_0001>

<bundles_post_ra>
// kernel: tpu_custom_call.1
= control target key start
LH: loop header
LB: loop body
LE: loop exit
PB: predicated region body
PF: predicated region fallthrough
CT: control target
= control target key end

     0   :  { %15 = vsyncpa [#allocation3], 0  ;;  %s1162_s0 = inlined_call_operand.vmem [shape: f32[8,1], index: 0, kind: input, shape index: {}]   ;;  %s1163_s1 = inlined_call_operand.vmem [shape: s32[8,1], index: 1, kind: input, shape index: {}]   ;;  %s1164_s2 = inlined_call_operand.vmem [shape: f32[2,64], index: 2, kind: input, shape index: {}]   ;;  %s1165_s3 = inlined_call_operand.hbm [shape: bf16[64,256], index: 3, kind: input, shape index: {}]   ;;  %s1166_s4 = inlined_call_operand.vmem [shape: f32[1,256], index: 4, kind: input, shape index: {}]   ;;  %s1167_s5 = inlined_call_operand.hbm [shape: bf16[256,128], index: 5, kind: input, shape index: {}]   ;;  %s1168_s6 = inlined_call_operand.vmem [shape: bf16[16,128], index: 6, kind: input, shape index: {}]   ;;  %s1169_s7 = inlined_call_operand.vmem [shape: f32[1,128], index: 7, kind: input, shape index: {}]   ;;  %s1170_s8 = inlined_call_operand.hbm [shape: bf16[128,128], index: 8, kind: input, shape index: {}]   ;;  %s1171_s9 = inlined_call_operand.vmem [shape: f32[1,128], index: 9, kind: input, shape index: {}]   ;;  %s1172_s10 = inlined_call_operand.hbm [shape: f32[8,128], index: 10, kind: output, shape index: {}]  }
   0x1   :  { %16 = vsyncpa [#allocation6], 0 }
   0x2   :  { %17 = vsyncpa [#allocation4], 0  ;;  %s968_s13 = smov [#allocation5]   ;;  %s874_s17 = scalar_lea.hbm %s1167_s5, 2048 }
   0x3   :  { %s43_s14 = sshll.u32 %s968_s13, 4  ;;  %p875_p0 = scmp.ne.s32.totalorder %s1167_s5, %s874_s17  ;;  %s44_s14 = int_to_ptr.vmem [resolvable:$true] %s43_s14 }
   0x4   :  { %p878_p1 = scmp.lt.u32.totalorder %s874_s17, %s1167_s5 }
   0x6   :  { %p880_p2 = pnand %p878_p1, %p875_p0 }
   0x8   :  { %883 = shalt.err (!%p880_p2)
}
   0x9   :  { %s884_s22 = scalar_lea.vmem %s44_s14, 2048  ;;  %p889_p4 = scmp.lt.s32.totalorder %s44_s14, %s44_s14 }
   0xa   :  { %p885_p3 = scmp.ne.s32.totalorder %s44_s14, %s884_s22  ;;  %p890_p5 = scmp.lt.s32.totalorder %s884_s22, %s884_s22 }
   0xc   :  { %p891_p6 = por %p890_p5, %p889_p4 }
   0xe   :  { %p892_p7 = pnand %p891_p6, %p885_p3 }
  0x10   :  { %895 = shalt.err (!%p892_p7)
}
  0x11   :  { %s969_s23 = smov 64   ;;  %s970_s24 = smov 4  }
  0x12   :  { %49 = dma.hbm_to_vmem [thread:$0]  %s1167_s5, 2048, %s44_s14, [#allocation6], %s969_s23, %s969_s23, %s970_s24  }
  0x13   :  { %s971_s27 = smov [#allocation2]   ;;  %s896_s11 = scalar_lea.hbm %s1165_s3, 1024 }
  0x14   :  { %s29_s28 = sshll.u32 %s971_s27, 4  ;;  %p897_p8 = scmp.ne.s32.totalorder %s1165_s3, %s896_s11  ;;  %s30_s28 = int_to_ptr.vmem [resolvable:$true] %s29_s28 }
  0x15   :  { %p900_p9 = scmp.lt.u32.totalorder %s896_s11, %s1165_s3 }
  0x17   :  { %p902_p10 = pnand %p900_p9, %p897_p8 }
  0x19   :  { %905 = shalt.err (!%p902_p10)
}
  0x1a   :  { %s906_s17 = scalar_lea.vmem %s30_s28, 1024  ;;  %p911_p12 = scmp.lt.s32.totalorder %s30_s28, %s30_s28 }
  0x1b   :  { %p907_p11 = scmp.ne.s32.totalorder %s30_s28, %s906_s17  ;;  %p912_p13 = scmp.lt.s32.totalorder %s906_s17, %s906_s17 }
  0x1d   :  { %p913_p0 = por %p912_p13, %p911_p12 }
  0x1f   :  { %p914_p1 = pnand %p913_p0, %p907_p11 }
  0x21   :  { %917 = shalt.err (!%p914_p1)
}
  0x22   :  { %s972_s5 = smov 128   ;;  %s973_s14 = smov 8  }
  0x23   :  { %35 = dma.hbm_to_vmem [thread:$0]  %s1165_s3, 1024, %s30_s28, [#allocation3], %s972_s5, %s972_s5, %s973_s14  }
  0x24   :  { %s974_s20 = smov [#allocation7]   ;;  %s918_s26 = scalar_lea.hbm %s1170_s8, 1024 }
  0x25   :  { %s59_s21 = sshll.u32 %s974_s20, 4  ;;  %p919_p2 = scmp.ne.s32.totalorder %s1170_s8, %s918_s26  ;;  %s60_s21 = int_to_ptr.vmem [resolvable:$true] %s59_s21 }
  0x26   :  { %p922_p3 = scmp.lt.u32.totalorder %s918_s26, %s1170_s8 }
  0x28   :  { %p924_p4 = pnand %p922_p3, %p919_p2 }
  0x2a   :  { %927 = shalt.err (!%p924_p4)
}
  0x2b   :  { %s928_s12 = scalar_lea.vmem %s60_s21, 1024  ;;  %p933_p6 = scmp.lt.s32.totalorder %s60_s21, %s60_s21 }
  0x2c   :  { %p929_p5 = scmp.ne.s32.totalorder %s60_s21, %s928_s12  ;;  %p934_p7 = scmp.lt.s32.totalorder %s928_s12, %s928_s12 }
  0x2e   :  { %p935_p8 = por %p934_p7, %p933_p6 }
  0x30   :  { %p936_p9 = pnand %p935_p8, %p929_p5 }
  0x32   :  { %939 = shalt.err (!%p936_p9)
}
  0x33   :  { %65 = dma.hbm_to_vmem [thread:$0]  %s1170_s8, 1024, %s60_s21, [#allocation6], %s969_s23, %s969_s23, %s970_s24  }
  0x34   :  { %962 = dma.done.wait [#allocation3], 1024  }
  0x35   :  { %963 = vsyncadd [#allocation3], 4294966272 }
  0x36   :  { %964 = dma.done.wait [#allocation6], 3072  }
  0x37   :  { %965 = vsyncadd [#allocation6], 4294964224  ;;  %v975_v0 = vmov 0   ;;  %v79_v1 = vld [vmem:[%s1162_s0] sm:$0xff]  ;;  %v976_v4 = vmov 0.0   ;;  %vm977_vm0 = vmmov 0   ;;  %v85_v13 = vlaneseq }
  0x38   :  { %820 = vset.pattern.permute.xlu0 %v975_v0  ;;  %358 = vmatprep.mubr.bf16.mxu1 %v975_v0  ;;  %v201_v2 = vld [vmem:[%s1163_s1] sm:$0xff]  ;;  %v825_v7 = vld [vmem:[#allocation2 + $0x14] ss:$8 sps:$4 sm:$0xff]   ;;  %v827_v8 = vld [vmem:[#allocation2 + $0x10] ss:$8 sps:$4 sm:$0xff]   ;;  %vm217_vm2 = vcmask 130048  }
  0x39   :  { %82 = vperm.xlu0 %820, %v79_v1   ;;  %v821_v3 = vld [vmem:[%s1168_s6] sm:$0xff]   ;;  %773 = vmatprep.subr.bf16.mxu0 %v976_v4  ;;  %v831_v11 = vld [vmem:[#allocation2 + $0x34] ss:$8 sps:$4 sm:$0xff]   ;;  %v833_v12 = vld [vmem:[#allocation2 + $0x30] ss:$8 sps:$4 sm:$0xff]   ;;  %v1095_v14 = vshrl.u32 %v85_v13, 7 }
  0x3a   :  { %774 = vmatpush3.bf16.msra.mxu0 %v821_v3  ;;  %775 = vmatprep.mubr.msk.bf16.mxu0 %vm977_vm0, %v976_v4  ;;  %v822_v5 = vld [vmem:[#allocation2 + $0x4] ss:$8 sps:$4 sm:$0xff]   ;;  %v824_v6 = vld [vmem:[#allocation2] ss:$8 sps:$4 sm:$0xff]   ;;  %v200_v22 = vand.u32 127, %v85_v13  ;;  %s984_s18 = smov [#allocation8]  }
  0x3b   :  { %326 = vmatprep.subr.bf16.mxu1 %v822_v5  ;;  %v828_v9 = vld [vmem:[#allocation2 + $0x24] ss:$8 sps:$4 sm:$0xff]   ;;  %v830_v10 = vld [vmem:[#allocation2 + $0x20] ss:$8 sps:$4 sm:$0xff]   ;;  %v87_v15 = vsub.s32 0, %v1095_v14  ;;  %v92_v17 = vsub.s32 1, %v1095_v14 }
  0x3c   :  { %327 = vmatpush1.bf16.msra.mxu1 %v824_v6  ;;  %v78_v16 = vld [vmem:[%s1164_s2] sm:$0x3]  ;;  %v978_v37 = vmov 683565275   ;;  %v979_v39 = vmov 2475754826  }
  0x3d   :  { %203 = vperm.xlu0 %820, %v201_v2   ;;  %328 = vmatprep.subr.bf16.mxu1 %v825_v7  ;;  %v88_v18 = vrot.slane %v78_v16, %v87_v15  ;;  %v93_v19 = vrot.slane %v78_v16, %v92_v17  ;;  %v980_v42 = vmov 2131351028   ;;  %v981_v45 = vmov 2102212464   ;;  %s685_s19 = sshll.u32 %s984_s18, 4  ;;  %s686_s19 = int_to_ptr.vmem [resolvable:$true] %s685_s19 }
  0x3e   :  { %v982_v48 = vmov 920167782   ;;  %v983_v51 = vmov 1326507024   ;;  %p945_p11 = scmp.lt.s32.totalorder %s686_s19, %s686_s19 }
  0x40   :  { %329 = vmatpush1.bf16.msra.mxu1 %v827_v8 }
  0x41   :  { %330 = vmatprep.subr.bf16.mxu1 %v828_v9 }
  0x44   :  { %331 = vmatpush1.bf16.msra.mxu1 %v830_v10 }
  0x45   :  { %332 = vmatprep.subr.bf16.mxu1 %v831_v11 }
  0x48   :  { %333 = vmatpush1.bf16.msra.mxu1 %v833_v12 }
  0x49   :  { %779 = vmatprep.subr.bf16.mxu1 %v976_v4 }
  0xb8   :  { %v83_v20 = vpop.permute.xlu0 %82 }
  0xb9   :  { %v89_v21 = vmul.f32 %v88_v18, %v83_v20 }
  0xbb   :  { %v1106_v23 = vadd.f32 %v93_v19, %v89_v21 }
  0xbc   :  { %v204_v24 = vpop.permute.xlu0 %203 }
  0xbd   :  { %v98_v25 = vand.u32 2139095040, %v1106_v23  ;;  %vm205_vm1 = vcmp.eq.s32.totalorder %v200_v22, %v204_v24  ;;  %v95_v31 = vand.u32 2147483647, %v1106_v23  ;;  %vm97_vm10 = vcmp.lt.s32.totalorder %v1106_v23, 0 }
  0xbe   :  { %v699_v26 = vsel %vm205_vm1, 1.0, %v976_v4  ;;  %vm187_vm15 = vweird.f32 %v1106_v23  ;;  %vm322_vm1 = vcmask 523264  }
  0xbf   :  { %v99_v27 = vshrl.u32 %v98_v25, 23  ;;  %v208_v28 = vpack.c.bf16 %v699_v26, %v699_v26  ;;  %v102_v34 = vand.u32 8388607, %v95_v31  ;;  %vm96_vm11 = vcmp.le.f32.partialorder %v95_v31, 0.7853982 }
  0xc1   :  { %v695_v29 = vadd.s32 4294967169, %v99_v27  ;;  %776 = vmatmul.mubr.msk.bf16.vlgmr.msra.gmra.mrb[0].mxu0 %vm217_vm2, %v208_v28  ;;  %v103_v53 = vor.u32 8388608, %v102_v34 }
  0xc3   :  { %v105_v30 = vadd.s32 1, %v695_v29  ;;  %v143_v3 = vshll.u32 %v103_v53, 8 }
  0xc5   :  { %vm106_vm3 = vcmp.gt.s32.totalorder %v105_v30, 0 }
  0xc6   :  { %v107_v32 = vsel %vm106_vm3, %v105_v30, 0 }
  0xc7   :  { %v109_v33 = vand.u32 31, %v107_v32  ;;  %v108_v36 = vshrl.u32 %v107_v32, 5 }
  0xc9   :  { %v110_v35 = vsub.s32 32, %v109_v33  ;;  %v112_v38 = vshll.u32 %v978_v37, %v109_v33  ;;  %v115_v40 = vshll.u32 %v979_v39, %v109_v33  ;;  %v118_v44 = vshll.u32 %v980_v42, %v109_v33 }
  0xca   :  { %v121_v47 = vshll.u32 %v981_v45, %v109_v33  ;;  %v124_v50 = vshll.u32 %v982_v48, %v109_v33  ;;  %vm127_vm4 = vcmp.lt.s32.totalorder %v108_v36, 1  ;;  %vm130_vm5 = vcmp.lt.s32.totalorder %v108_v36, 4 }
  0xcb   :  { %v113_v41 = vshrl.u32 %v979_v39, %v110_v35  ;;  %v116_v43 = vshrl.u32 %v980_v42, %v110_v35  ;;  %v119_v46 = vshrl.u32 %v981_v45, %v110_v35  ;;  %v122_v49 = vshrl.u32 %v982_v48, %v110_v35 }
  0xcc   :  { %v125_v52 = vshrl.u32 %v983_v51, %v110_v35  ;;  %v111_v62 = vshrl.u32 %v978_v37, %v110_v35  ;;  %vm129_vm6 = vcmp.lt.s32.totalorder %v108_v36, 3  ;;  %vm128_vm7 = vcmp.lt.s32.totalorder %v108_v36, 2 }
  0xcd   :  { %v114_v54 = vor.u32 %v113_v41, %v112_v38  ;;  %v117_v55 = vor.u32 %v116_v43, %v115_v40  ;;  %v120_v56 = vor.u32 %v119_v46, %v118_v44  ;;  %v123_v57 = vor.u32 %v122_v49, %v121_v47 }
  0xce   :  { %v126_v58 = vor.u32 %v125_v52, %v124_v50 }
  0xcf   :  { %v132_v59 = vsel %vm130_vm5, %v120_v56, 2102212464  ;;  %v135_v60 = vsel %vm127_vm4, %v114_v54, %v117_v55  ;;  %v139_v61 = vsel %vm127_vm4, %v117_v55, %v120_v56  ;;  %v136_v63 = vsel %vm130_vm5, %v123_v57, 920167782 }
  0xd0   :  { %v140_v0 = vsel %vm130_vm5, %v126_v58, 1326507024  ;;  %v137_v1 = vsel %vm129_vm6, %v120_v56, %v136_v63  ;;  %v131_v5 = vsel %vm127_vm4, %v111_v62, %v114_v54  ;;  %v133_v6 = vsel %vm129_vm6, %v117_v55, %v132_v59  ;;  %v836_v62 = vld [vmem:[#allocation5 + $0x48] sm:$0xff]  }
  0xd1   :  { %v141_v2 = vsel %vm129_vm6, %v123_v57, %v140_v0  ;;  %v138_v7 = vsel %vm128_vm7, %v135_v60, %v137_v1  ;;  %v134_v13 = vsel %vm128_vm7, %v131_v5, %v133_v6  ;;  %v834_v60 = vld [vmem:[#allocation5 + $0x40] sm:$0xff]   ;;  %v837_v63 = vld [vmem:[#allocation5 + $0x8] sm:$0xff]   ;;  %v838_v0 = vld [vmem:[#allocation5 + $0x50] sm:$0xff]  }
  0xd2   :  { %v142_v8 = vsel %vm128_vm7, %v139_v61, %v141_v2  ;;  %v1116_v11 = vmul.u32.u64.low %v143_v3, %v138_v7  ;;  %v1117_v12 = vmul.u32.u64.high %v143_v3, %v138_v7, %v1116_v11  ;;  %v150_v18 = vmul.u32 %v143_v3, %v134_v13  ;;  %v835_v61 = vld [vmem:[#allocation5] sm:$0xff]   ;;  %742 = vmatprep.subr.bf16.mxu0 %v834_v60  ;;  %v839_v1 = vld [vmem:[#allocation5 + $0x10] sm:$0xff]   ;;  %v841_v2 = vld [vmem:[#allocation5 + $0x18] sm:$0xff]  }
  0xd3   :  { %v1113_v9 = vmul.u32.u64.low %v143_v3, %v142_v8  ;;  %v1114_v10 = vmul.u32.u64.high %v143_v3, %v142_v8, %v1113_v9  ;;  %743 = vmatpush3.bf16.msra.mxu0 %v835_v61  ;;  %v842_v3 = vld [vmem:[#allocation5 + $0x60] sm:$0xff]   ;;  %v844_v6 = vld [vmem:[#allocation5 + $0x68] sm:$0xff]   ;;  %v846_v8 = vld [vmem:[#allocation5 + $0x70] sm:$0xff]  }
  0xd4   :  { %v153_v16 = vadd.s32 1, %v1117_v12  ;;  %744 = vmatprep.subr.bf16.mxu0 %v836_v62  ;;  %v843_v5 = vld [vmem:[#allocation5 + $0x20] sm:$0xff]   ;;  %v845_v7 = vld [vmem:[#allocation5 + $0x28] sm:$0xff]   ;;  %v847_v9 = vld [vmem:[#allocation5 + $0x30] sm:$0xff]  }
  0xd5   :  { %vm152_vm8 = vc.u32 %v1114_v10, %v1116_v11  ;;  %v151_v32 = vadd.s32 %v1116_v11, %v1114_v10  ;;  %v848_v10 = vld [vmem:[#allocation5 + $0x78] sm:$0xff]  }
  0xd6   :  { %v154_v19 = vsel %vm152_vm8, %v153_v16, %v1117_v12  ;;  %v849_v11 = vld [vmem:[#allocation5 + $0x38] sm:$0xff]  }
  0xd7   :  { %v155_v20 = vadd.s32 %v154_v19, %v150_v18  ;;  %745 = vmatpush3.bf16.msra.mxu0 %v837_v63  ;;  %v270_v19 = vld [vmem:[%s1166_s4] sm:$0x3] }
  0xd8   :  { %746 = vmatprep.subr.bf16.mxu0 %v838_v0 }
  0xd9   :  { %v156_v21 = vadd.s32 536870912, %v155_v20 }
  0xdb   :  { %v157_v22 = vshrl.u32 %v156_v21, 30  ;;  %747 = vmatpush3.bf16.msra.mxu0 %v839_v1  ;;  %v279_v21 = vrot.slane %v270_v19, %v92_v17 }
  0xdd   :  { %v158_v24 = vshll.u32 %v157_v22, 30  ;;  %v181_v44 = vsub.s32 4, %v157_v22 }
  0xdf   :  { %v159_v25 = vsub.s32 %v155_v20, %v158_v24  ;;  %v182_v47 = vsel %vm97_vm10, %v181_v44, %v157_v22  ;;  %v275_v20 = vrot.slane %v270_v19, %v87_v15  ;;  %v855_v44 = vld [vmem:[#allocation7 + $0x28] sm:$0xff]  }
  0xe0   :  { %v184_v49 = vsel %vm96_vm11, 0, %v182_v47 }
  0xe1   :  { %v161_v26 = vsub.s32 0, %v159_v25  ;;  %v188_v50 = vadd.s32 3, %v184_v49 }
  0xe3   :  { %v696_v27 = vmin.u32 %v161_v26, %v159_v25  ;;  %v189_v51 = vand.u32 3, %v188_v50 }
  0xe5   :  { %v163_v28 = vclz %v696_v27  ;;  %vm194_vm12 = vcmp.eq.s32.totalorder %v189_v51, 2  ;;  %vm191_vm13 = vcmp.eq.s32.totalorder %v189_v51, 0  ;;  %vm190_vm14 = vcmp.lt.s32.totalorder %v189_v51, 2  ;;  %v729_v51 = vld [vmem:[%s1169_s7] ss:$0 sm:$0xff]  ;;  %s940_s7 = scalar_lea.vmem %s686_s19, 128 }
  0xe6   :  { %p941_p10 = scmp.ne.s32.totalorder %s686_s19, %s940_s7  ;;  %p946_p12 = scmp.lt.s32.totalorder %s940_s7, %s940_s7 }
  0xe7   :  { %v697_v29 = vadd.s32 4294967294, %v163_v28 }
  0xe8   :  { %p947_p13 = por %p946_p12, %p945_p11 }
  0xe9   :  { %vm698_vm9 = vcmp.lt.s32.totalorder %v697_v29, 0 }
  0xea   :  { %v166_v30 = vsel %vm698_vm9, 0, %v697_v29  ;;  %p948_p0 = pnand %p947_p13, %p941_p10 }
  0xeb   :  { %v167_v33 = vsub.s32 32, %v166_v30  ;;  %v171_v34 = vsub.s32 4294967266, %v166_v30  ;;  %v168_v35 = vshll.u32 %v159_v25, %v166_v30 }
  0xed   :  { %v169_v36 = vshrl.u32 %v151_v32, %v167_v33  ;;  %v172_v37 = vadd.s32 127, %v171_v34 }
  0xef   :  { %v170_v38 = vor.u32 %v169_v36, %v168_v35  ;;  %v173_v39 = vshll.u32 %v172_v37, 23 }
  0xf1   :  { %v174_v40 = vor.u32 4788187, %v173_v39  ;;  %v177_v42 = vcvt.s32.f32 %v170_v38  ;;  %v850_v39 = vld [vmem:[#allocation7] sm:$0xff]  }
  0xf3   :  { %v175_v41 = vand.u32 2147483647, %v174_v40  ;;  %v851_v40 = vld [vmem:[#allocation7 + $0x8] sm:$0xff]  }
  0xf5   :  { %v178_v43 = vmul.f32 %v177_v42, %v175_v41  ;;  %v852_v41 = vld [vmem:[#allocation7 + $0x10] sm:$0xff]   ;;  %v853_v42 = vld [vmem:[#allocation7 + $0x18] sm:$0xff]  }
  0xf7   :  { %v179_v45 = vxor.u32 2147483648, %v178_v43 }
  0xf9   :  { %v180_v46 = vsel %vm97_vm10, %v179_v45, %v178_v43  ;;  %v854_v43 = vld [vmem:[#allocation7 + $0x20] sm:$0xff]   ;;  %v856_v45 = vld [vmem:[#allocation7 + $0x30] sm:$0xff]  }
  0xfa   :  { %v183_v48 = vsel %vm96_vm11, %v1106_v23, %v180_v46  ;;  %v840_v23 = vld [vmem:[#allocation5 + $0x58] sm:$0xff]  }
  0xfb   :  { %858 = vcosq.f32 %v183_v48  ;;  %748 = vmatprep.subr.bf16.mxu0 %v840_v23  ;;  %v857_v46 = vld [vmem:[#allocation7 + $0x38] sm:$0xff]  }
  0xfc   :  { %860 = vsinq.f32 %v183_v48  ;;  %749 = vmatpush3.bf16.msra.mxu0 %v841_v2 }
  0xfd   :  { %750 = vmatprep.subr.bf16.mxu0 %v842_v3 }
 0x100   :  { %751 = vmatpush3.bf16.msra.mxu0 %v843_v5 }
 0x101   :  { %752 = vmatprep.subr.bf16.mxu0 %v844_v6 }
 0x104   :  { %753 = vmatpush3.bf16.msra.mxu0 %v845_v7 }
 0x105   :  { %v859_v52 = vpop.eup %858  ;;  %754 = vmatprep.subr.bf16.mxu0 %v846_v8 }
 0x106   :  { %v861_v53 = vpop.eup %860  ;;  %v195_v54 = vxor.u32 2147483648, %v859_v52 }
 0x107   :  { %v192_v55 = vxor.u32 2147483648, %v861_v53 }
 0x108   :  { %v196_v56 = vsel %vm194_vm12, %v195_v54, %v861_v53  ;;  %755 = vmatpush3.bf16.msra.mxu0 %v847_v9 }
 0x109   :  { %v193_v57 = vsel %vm191_vm13, %v859_v52, %v192_v55  ;;  %756 = vmatprep.subr.bf16.mxu0 %v848_v10 }
 0x10a   :  { %v197_v31 = vsel %vm190_vm14, %v193_v57, %v196_v56 }
 0x10b   :  { %v198_v58 = vsel %vm187_vm15, nan, %v197_v31 }
 0x10c   :  { %v261_v59 = vpack.c.bf16 %v198_v58, %v198_v58  ;;  %757 = vmatpush3.bf16.msra.mxu0 %v849_v11 }
 0x10e   :  { %710 = vmatmul.mubr.msk.bf16.vlgmr.msra.gmra.mrb[0].mxu1 %vm322_vm1, %v261_v59  ;;  %v731_v59 = vld [vmem:[%s1171_s9] ss:$0 sm:$0xff] }
 0x10f   :  { %795 = vmatprep.mubr.msk.bf16.mxu1 %vm977_vm0, %v976_v4  ;;  %780 = vmatpush3.bf16.msra.mxu1 %v850_v39 }
 0x110   :  { %781 = vmatprep.subr.bf16.mxu1 %v976_v4 }
 0x113   :  { %782 = vmatpush3.bf16.msra.mxu1 %v851_v40 }
 0x114   :  { %783 = vmatprep.subr.bf16.mxu1 %v976_v4 }
 0x117   :  { %784 = vmatpush3.bf16.msra.mxu1 %v852_v41 }
 0x118   :  { %785 = vmatprep.subr.bf16.mxu1 %v976_v4 }
 0x11b   :  { %786 = vmatpush3.bf16.msra.mxu1 %v853_v42 }
 0x11c   :  { %787 = vmatprep.subr.bf16.mxu1 %v976_v4 }
 0x11f   :  { %788 = vmatpush3.bf16.msra.mxu1 %v854_v43 }
 0x120   :  { %789 = vmatprep.subr.bf16.mxu1 %v976_v4 }
 0x123   :  { %790 = vmatpush3.bf16.msra.mxu1 %v855_v44 }
 0x124   :  { %791 = vmatprep.subr.bf16.mxu1 %v976_v4 }
 0x127   :  { %792 = vmatpush3.bf16.msra.mxu1 %v856_v45 }
 0x128   :  { %793 = vmatprep.subr.bf16.mxu1 %v976_v4 }
 0x12b   :  { %794 = vmatpush3.bf16.msra.mxu1 %v857_v46 }
 0x194   :  { %v255_v12 = vpop.f32.mrb[0].mxu0 }
 0x195   :  { %v777_v13 = vpop.f32.mrb[1].mxu0 }
 0x196   :  { %v258_v16 = vpop.f32.mrb[2].mxu0 }
 0x197   :  { %v778_v18 = vpop.f32.mrb[3].mxu0 }
 0x1e1   :  { %v360_v22 = vpop.f32.mrb[0].mxu1 }
 0x1e2   :  { %v361_v24 = vadd.f32 %v360_v22, %v275_v20  ;;  %v362_v25 = vpop.f32.mrb[1].mxu1 }
 0x1e3   :  { %v363_v26 = vadd.f32 %v362_v25, %v279_v21  ;;  %v364_v27 = vpop.f32.mrb[2].mxu1 }
 0x1e4   :  { %v711_v28 = vmul.f32 -1.442695, %v361_v24  ;;  %v365_v29 = vpop.f32.mrb[3].mxu1 }
 0x1e5   :  { %v712_v30 = vmul.f32 -1.442695, %v363_v26 }
 0x1e6   :  { %862 = vpow2.f32 %v711_v28 }
 0x1e7   :  { %864 = vpow2.f32 %v712_v30 }
 0x1f0   :  { %v863_v32 = vpop.eup %862 }
 0x1f1   :  { %v865_v33 = vpop.eup %864  ;;  %v373_v34 = vadd.f32 1.0, %v863_v32 }
 0x1f2   :  { %v374_v35 = vadd.f32 1.0, %v865_v33 }
 0x1f3   :  { %866 = vrcp.f32 %v373_v34 }
 0x1f4   :  { %868 = vrcp.f32 %v374_v35 }
 0x1fd   :  { %v867_v15 = vpop.eup %866 }
 0x1fe   :  { %v869_v36 = vpop.eup %868  ;;  %v379_v14 = vmul.f32 %v867_v15, %v361_v24 }
 0x1ff   :  { %v380_v17 = vmul.f32 %v869_v36, %v363_v26 }
 0x200   :  { %v381_v38 = vpack.c.bf16 %v379_v14, %v379_v14 }
 0x201   :  { %v382_v37 = vpack.c.bf16 %v380_v17, %v380_v17 }
 0x203   :  { %543 = vmatprep.mubr.bf16.mxu0 %v382_v37 }
 0x204   :  { %544 = vmatmul.mubr.bf16.vlgmr.msra.gmra.mrb[4].mxu0 %v381_v38 }
 0x2d7   :  { %v758_v47 = vpop.f32.mrb[4].mxu0 }
 0x2d8   :  { %v759_v48 = vpop.f32.mrb[5].mxu0 }
 0x2d9   :  { %v760_v49 = vadd.f32 %v759_v48, %v758_v47  ;;  %v761_v50 = vpop.f32.mrb[6].mxu0 }
 0x2da   :  { %v762_v52 = vpop.f32.mrb[7].mxu0 }
 0x2db   :  { %v546_v53 = vadd.f32 %v760_v49, %v255_v12 }
 0x2dd   :  { %v558_v54 = vadd.f32 %v729_v51, %v546_v53 }
 0x2df   :  { %v730_v55 = vmul.f32 -1.442695, %v558_v54 }
 0x2e1   :  { %870 = vpow2.f32 %v730_v55 }
 0x2eb   :  { %v871_v56 = vpop.eup %870 }
 0x2ec   :  { %v562_v57 = vadd.f32 1.0, %v871_v56 }
 0x2ee   :  { %872 = vrcp.f32 %v562_v57 }
 0x2f8   :  { %v873_v31 = vpop.eup %872 }
 0x2f9   :  { %v565_v4 = vmul.f32 %v873_v31, %v558_v54 }
 0x2fb   :  { %v566_v58 = vpack.c.bf16 %v565_v4, %v565_v4 }
 0x2fd   :  { %796 = vmatmul.mubr.bf16.vlgmr.msra.gmra.mrb[4].mxu1 %v566_v58 }
 0x3d0   :  { %v672_v60 = vpop.f32.mrb[4].mxu1 }
 0x3d1   :  { %v673_v61 = vadd.f32 %v731_v59, %v672_v60  ;;  %v797_v62 = vpop.f32.mrb[5].mxu1 }
 0x3d2   :  { %v675_v63 = vpop.f32.mrb[6].mxu1 }
 0x3d3   :  { %678 = vst [vmem:[#allocation8] sm:$0xff] %v673_v61  ;;  %v798_v0 = vpop.f32.mrb[7].mxu1 }
 0x3d4   :  { %951 = shalt.err (!%p948_p0)
}
 0x3d5   :  { %s952_s9 = scalar_lea.hbm %s1172_s10, 128 }
 0x3d6   :  { %p953_p1 = scmp.ne.s32.totalorder %s1172_s10, %s952_s9  ;;  %p956_p2 = scmp.lt.u32.totalorder %s952_s9, %s1172_s10 }
 0x3d8   :  { %p958_p3 = pnand %p956_p2, %p953_p1 }
 0x3da   :  { %961 = shalt.err (!%p958_p3)
}
 0x3db   :  { %688 = dma.vmem_to_hbm [thread:$0]  %s686_s19, 128, %s1172_s10, [#allocation4]  }
 0x3dc   :  { %966 = dma.done.wait [#allocation4], 128  }
 0x3dd   :  { %967 = vsyncadd [#allocation4], 4294967168 }
 0x3de   :  { %692 = vsyncpa [#allocation3], 1 }
 0x3df   :  { %693 = vsyncpa [#allocation6], 1 }
 0x3e0   :  { %694 = vsyncpa [#allocation4], 1 }

</bundles_post_ra>
